<compile_context>
chip_gen: v7x
topology: tpu7x:2x2x1
jax: 0.10.0
libtpu: 0.0.40
codegen_flags: <defaults>
</compile_context>

<pallas_src>
import functools

import jax
import jax.numpy as jnp
from jax.experimental import pallas as pl
from jax.experimental.pallas import tpu as pltpu


def _conv1d_relu_kernel(x_ref, w_ref, b_ref, o_ref, *, K, stride, L_out, TB,
                        compute_dtype):
    # x_ref: (TB, C_in, L_in)   padded input rows (input dtype or compute dtype)
    # w_ref: (K, C_out, C_in)   conv weights (compute dtype), grid-resident
    # b_ref: (C_out, 1)         bias (f32), grid-resident
    # o_ref: (TB, C_out, L_out) output tile, written in final layout
    bias = b_ref[...]                                     # (C_out, 1) f32
    for b in range(TB):                                   # static unroll
        acc = None
        for k in range(K):                                # K shifted matmuls
            if stride == 1:
                xk = x_ref[b, :, k:k + L_out]             # (C_in, L_out)
            else:
                xk = x_ref[b, :, pl.ds(k, L_out, stride)]
            xk = xk.astype(compute_dtype)                 # no-op if already cast
            part = jnp.dot(w_ref[k], xk, preferred_element_type=jnp.float32)
            acc = part if acc is None else acc + part
        acc = acc + bias                                  # bias broadcast over lanes
        o_ref[b] = jnp.maximum(acc, 0.0).astype(o_ref.dtype)


def _vmem_budget_bytes():
    cap = 64 * 1024 * 1024                                # conservative default (v7x)
    try:
        cap = int(pltpu.get_tpu_info().vmem_capacity_bytes)
    except Exception:
        pass
    # Leave headroom under the physical capacity of the current generation.
    return min(cap * 7 // 10, 100 * 1024 * 1024)


def conv1d_relu(x, weight, bias, *, stride=1, padding=0,
                compute_dtype=jnp.bfloat16):
    """Equivalent of PyTorch: relu(conv1d(x, weight, bias, stride, padding))."""
    N, C_in, L = x.shape
    C_out, C_in_w, K = weight.shape
    assert C_in == C_in_w, (C_in, C_in_w)
    L_out = (L + 2 * padding - K) // stride + 1
    assert L_out >= 1, "output length must be positive"

    # ---- activation prep: at most ONE fused HBM pass (pad + cast) ----
    if padding > 0:
        x_p = jnp.pad(x, ((0, 0), (0, 0), (padding, padding))).astype(compute_dtype)
    else:
        x_p = x          # fed as-is; kernel casts after the (single) DMA
    L_in = x_p.shape[-1]

    # ---- tiny parameter re-layout (negligible bytes) ----
    w = jnp.transpose(weight, (2, 0, 1)).astype(compute_dtype)   # (K, C_out, C_in)
    b2d = bias.astype(jnp.float32).reshape(C_out, 1)

    # ---- generation-aware batch tiling ----
    budget = _vmem_budget_bytes()
    in_row = C_in * L_in * jnp.dtype(x_p.dtype).itemsize
    out_row = C_out * L_out * jnp.dtype(x.dtype).itemsize
    w_bytes = int(w.size) * jnp.dtype(compute_dtype).itemsize
    fixed = 2 * w_bytes + 4 * C_out + (1 << 20)           # resident params + slack
    TB = 1
    for cand in range(min(N, 8), 0, -1):
        vmem_needed = fixed + 2 * cand * (in_row + out_row)   # double-buffered I/O
        if vmem_needed > budget:
            continue
        if N >= 2 and pl.cdiv(N, cand) < 2:
            continue                                      # keep >=2 tiles for v7x megacore
        TB = cand
        break
    grid = (pl.cdiv(N, TB),)
    vmem_limit = min(max(budget, fixed + 2 * TB * (in_row + out_row) + (4 << 20)),
                     120 * 1024 * 1024)

    kernel = functools.partial(
        _conv1d_relu_kernel, K=K, stride=stride, L_out=L_out, TB=TB,
        compute_dtype=compute_dtype)

    flops = 2 * N * L_out * C_out * C_in * K
    bytes_accessed = (int(x_p.size) * jnp.dtype(x_p.dtype).itemsize
                      + w_bytes + 4 * C_out
                      + N * C_out * L_out * jnp.dtype(x.dtype).itemsize)

    return pl.pallas_call(
        kernel,
        out_shape=jax.ShapeDtypeStruct((N, C_out, L_out), x.dtype),
        grid_spec=pltpu.PrefetchScalarGridSpec(
            num_scalar_prefetch=0,
            grid=grid,
            in_specs=[
                pl.BlockSpec((TB, C_in, L_in), lambda i: (i, 0, 0)),   # activations
                pl.BlockSpec((K, C_out, C_in), lambda i: (0, 0, 0)),   # weights (resident)
                pl.BlockSpec((C_out, 1), lambda i: (0, 0)),            # bias (resident)
            ],
            out_specs=pl.BlockSpec((TB, C_out, L_out), lambda i: (i, 0, 0)),
        ),
        compiler_params=pltpu.CompilerParams(
            dimension_semantics=("parallel",),
            vmem_limit_bytes=int(vmem_limit),
        ),
        cost_estimate=pl.CostEstimate(
            flops=flops, transcendentals=0, bytes_accessed=int(bytes_accessed)),
    )(x_p, w, b2d)


class Conv1dReLU:
    """JAX/Pallas port of the PyTorch Conv1dReLU module."""

    def __init__(self, in_channels, out_channels, kernel_size, stride=1,
                 padding=0, key=None):
        if key is None:
            key = jax.random.PRNGKey(0)
        kw, kb = jax.random.split(key)
        # Deterministic init mirroring PyTorch Conv1d default (uniform(-bound, bound)).
        fan_in = in_channels * kernel_size
        bound = 1.0 / float(jnp.sqrt(jnp.asarray(fan_in, jnp.float32)))
        self.weight = jax.random.uniform(
            kw, (out_channels, in_channels, kernel_size), jnp.float32, -bound, bound)
        self.bias = jax.random.uniform(
            kb, (out_channels,), jnp.float32, -bound, bound)
        self.stride = stride
        self.padding = padding

    def __call__(self, x):
        return conv1d_relu(x, self.weight, self.bias,
                           stride=self.stride, padding=self.padding)


if __name__ == "__main__":
    key = jax.random.PRNGKey(0)
    k_x, k_m = jax.random.split(key)

    # Small shapes consistent with the module: batch=2, C_in=4, L=16, C_out=8, K=3.
    N, C_in, L = 2, 4, 16
    C_out, K, stride, padding = 8, 3, 1, 1

    x = jax.random.normal(k_x, (N, C_in, L), dtype=jnp.float32)
    mod = Conv1dReLU(C_in, C_out, K, stride=stride, padding=padding, key=k_m)

    out = jax.block_until_ready(mod(x))

    # Reference: XLA conv (same semantics as torch.nn.Conv1d) + bias + ReLU, in f32.
    ref = jax.lax.conv_general_dilated(
        x, mod.weight,
        window_strides=(stride,),
        padding=[(padding, padding)],
        dimension_numbers=("NCH", "OIH", "NCH"),
    ) + mod.bias.reshape(1, C_out, 1)
    ref = jnp.maximum(ref, 0.0)

    L_out = (L + 2 * padding - K) // stride + 1
    assert out.shape == (N, C_out, L_out), out.shape
    # bf16 MXU operands -> ~1e-2 level tolerance vs the f32 reference.
    assert jnp.allclose(out, ref, atol=5e-2, rtol=5e-2), \
        float(jnp.max(jnp.abs(out - ref)))

    print("KERNEL_OK")
</pallas_src>

<mosaic_0001>
module attributes {stable_mosaic.version = 11 : i64} {
  func.func @_conv1d_relu_kernel(%arg0: i32, %arg1: memref<1x4x18xbf16, #tpu.memory_space<vmem>>, %arg2: memref<3x8x4xbf16, #tpu.memory_space<vmem>>, %arg3: memref<8x1xf32, #tpu.memory_space<vmem>>, %arg4: memref<1x8x16xf32, #tpu.memory_space<vmem>>) attributes {dimension_semantics = [#tpu.dimension_semantics<parallel>], iteration_bounds = array<i64: 2>, scalar_prefetch = 0 : i64, scratch_operands = 0 : i64, tpu.core_type = #tpu.core_type<tc>, window_params = [{transform_indices = @transform_0, window_bounds = array<i64: 1, 4, 18>}, {pipeline_mode = #tpu.pipeline_mode<synchronous>, transform_indices = @transform_1, window_bounds = array<i64: 3, 8, 4>}, {pipeline_mode = #tpu.pipeline_mode<synchronous>, transform_indices = @transform_2, window_bounds = array<i64: 8, 1>}, {transform_indices = @transform_3, window_bounds = array<i64: 1, 8, 16>}]} {
    %c0 = arith.constant 0 : index
    %c0_0 = arith.constant 0 : index
    %0 = vector.load %arg3[%c0, %c0_0] : memref<8x1xf32, #tpu.memory_space<vmem>>, vector<8x1xf32>
    %c0_1 = arith.constant 0 : index
    %c0_2 = arith.constant 0 : index
    %c0_3 = arith.constant 0 : index
    %1 = vector.load %arg1[%c0_1, %c0_2, %c0_3] : memref<1x4x18xbf16, #tpu.memory_space<vmem>>, vector<1x4x16xbf16>
    %2 = vector.shape_cast %1 : vector<1x4x16xbf16> to vector<4x16xbf16>
    %c0_4 = arith.constant 0 : index
    %c0_5 = arith.constant 0 : index
    %c0_6 = arith.constant 0 : index
    %3 = vector.load %arg2[%c0_4, %c0_5, %c0_6] : memref<3x8x4xbf16, #tpu.memory_space<vmem>>, vector<1x8x4xbf16>
    %4 = vector.shape_cast %3 : vector<1x8x4xbf16> to vector<8x4xbf16>
    %cst = arith.constant dense<0.000000e+00> : vector<8x16xf32>
    %5 = tpu.matmul %4, %2, %cst {dimension_numbers = #tpu.dot_dimension_numbers<[1], [0], [0], [1], [0, 0, 1, 1], [], []>} : vector<8x4xbf16>, vector<4x16xbf16>, vector<8x16xf32> -> vector<8x16xf32>
    %c0_7 = arith.constant 0 : index
    %c0_8 = arith.constant 0 : index
    %c1 = arith.constant 1 : index
    %6 = vector.load %arg1[%c0_7, %c0_8, %c1] : memref<1x4x18xbf16, #tpu.memory_space<vmem>>, vector<1x4x16xbf16>
    %7 = vector.shape_cast %6 : vector<1x4x16xbf16> to vector<4x16xbf16>
    %c1_9 = arith.constant 1 : index
    %c0_10 = arith.constant 0 : index
    %c0_11 = arith.constant 0 : index
    %8 = vector.load %arg2[%c1_9, %c0_10, %c0_11] : memref<3x8x4xbf16, #tpu.memory_space<vmem>>, vector<1x8x4xbf16>
    %9 = vector.shape_cast %8 : vector<1x8x4xbf16> to vector<8x4xbf16>
    %cst_12 = arith.constant dense<0.000000e+00> : vector<8x16xf32>
    %10 = tpu.matmul %9, %7, %cst_12 {dimension_numbers = #tpu.dot_dimension_numbers<[1], [0], [0], [1], [0, 0, 1, 1], [], []>} : vector<8x4xbf16>, vector<4x16xbf16>, vector<8x16xf32> -> vector<8x16xf32>
    %11 = arith.addf %5, %10 : vector<8x16xf32>
    %c0_13 = arith.constant 0 : index
    %c0_14 = arith.constant 0 : index
    %c2 = arith.constant 2 : index
    %12 = vector.load %arg1[%c0_13, %c0_14, %c2] : memref<1x4x18xbf16, #tpu.memory_space<vmem>>, vector<1x4x16xbf16>
    %13 = vector.shape_cast %12 : vector<1x4x16xbf16> to vector<4x16xbf16>
    %c2_15 = arith.constant 2 : index
    %c0_16 = arith.constant 0 : index
    %c0_17 = arith.constant 0 : index
    %14 = vector.load %arg2[%c2_15, %c0_16, %c0_17] : memref<3x8x4xbf16, #tpu.memory_space<vmem>>, vector<1x8x4xbf16>
    %15 = vector.shape_cast %14 : vector<1x8x4xbf16> to vector<8x4xbf16>
    %cst_18 = arith.constant dense<0.000000e+00> : vector<8x16xf32>
    %16 = tpu.matmul %15, %13, %cst_18 {dimension_numbers = #tpu.dot_dimension_numbers<[1], [0], [0], [1], [0, 0, 1, 1], [], []>} : vector<8x4xbf16>, vector<4x16xbf16>, vector<8x16xf32> -> vector<8x16xf32>
    %17 = arith.addf %11, %16 : vector<8x16xf32>
    %18 = vector.broadcast %0 : vector<8x1xf32> to vector<8x16xf32>
    %19 = arith.addf %17, %18 : vector<8x16xf32>
    %cst_19 = arith.constant 0.000000e+00 : f32
    %20 = vector.broadcast %cst_19 : f32 to vector<8x16xf32>
    %21 = arith.maximumf %19, %20 : vector<8x16xf32>
    %c0_20 = arith.constant 0 : index
    %c0_21 = arith.constant 0 : index
    %c0_22 = arith.constant 0 : index
    %22 = vector.load %arg4[%c0_20, %c0_21, %c0_22] : memref<1x8x16xf32, #tpu.memory_space<vmem>>, vector<1x8x16xf32>
    %23 = vector.shape_cast %22 : vector<1x8x16xf32> to vector<8x16xf32>
    %24 = vector.shape_cast %21 : vector<8x16xf32> to vector<1x8x16xf32>
    tpu.vector_store %arg4[%c0_20, %c0_21, %c0_22], %24 {strides = array<i32>} : memref<1x8x16xf32, #tpu.memory_space<vmem>>, vector<1x8x16xf32>,
    return
  }
  func.func @transform_0(%arg0: i32) -> (i32, i32, i32) {
    %c0_i32 = arith.constant 0 : i32
    %c0_i32_0 = arith.constant 0 : i32
    %c0_i32_1 = arith.constant 0 : i32
    return %arg0, %c0_i32, %c0_i32_0 : i32, i32, i32
  }
  func.func @transform_1(%arg0: i32) -> (i32, i32, i32) {
    %c0_i32 = arith.constant 0 : i32
    %c0_i32_0 = arith.constant 0 : i32
    %c0_i32_1 = arith.constant 0 : i32
    %c0_i32_2 = arith.constant 0 : i32
    return %c0_i32, %c0_i32_0, %c0_i32_1 : i32, i32, i32
  }
  func.func @transform_2(%arg0: i32) -> (i32, i32) {
    %c0_i32 = arith.constant 0 : i32
    %c0_i32_0 = arith.constant 0 : i32
    %c0_i32_1 = arith.constant 0 : i32
    return %c0_i32, %c0_i32_0 : i32, i32
  }
  func.func @transform_3(%arg0: i32) -> (i32, i32, i32) {
    %c0_i32 = arith.constant 0 : i32
    %c0_i32_0 = arith.constant 0 : i32
    %c0_i32_1 = arith.constant 0 : i32
    return %arg0, %c0_i32, %c0_i32_0 : i32, i32, i32
  }
}

</mosaic_0001>

<bundles_post_ra>
// kernel: tpu_custom_call.1
= control target key start
LH: loop header
LB: loop body
LE: loop exit
PB: predicated region body
PF: predicated region fallthrough
CT: control target
= control target key end

     0   :  { %8 = vsyncpa [#allocation3], 0  ;;  %s717_s0 = inlined_call_operand.vmem [shape: bf16[2,4,18], index: 0, kind: input, shape index: {}]   ;;  %s718_s1 = inlined_call_operand.vmem [shape: bf16[3,8,4], index: 1, kind: input, shape index: {}]   ;;  %s719_s2 = inlined_call_operand.vmem [shape: f32[8,1], index: 2, kind: input, shape index: {}]   ;;  %s720_s3 = inlined_call_operand.hbm [shape: f32[2,8,16], index: 3, kind: output, shape index: {}]  }
   0x1   :  { %10 = vsyncpa [#allocation3 + $0x1], 0  ;;  %s596_s12 = smov 0   ;;  %s598_s13 = smov 0  }
   0x2   :  { %s600_s14 = smov 0   ;;  %s602_s15 = smov 0  }
   0x3 LB: > { %s617_s16 = sadd.s32 4294967295, %s567_s15   ;;  %s418_s17 = sadd.s32 4294967294, %s567_s15   ;;  %s567_s15 = sphi %s602_s15, %s726_s15   ;;  %s563_s14 = sphi %s600_s14, %s725_s14   ;;  %s559_s13 = sphi %s598_s13, %s724_s13   ;;  %s555_s12 = sphi %s596_s12, %s723_s12  }
   0x4   : > { %s621_s18 = sadd.s32 1, %s567_s15   ;;  %s91_s19 = sadd.s32 1, %s563_s14 }
   0x5   : > { %s88_s20 = ssub.s32 %s567_s15, %s621_s18  ;;  %p101_p0 = scmp.ne.s32.totalorder %s563_s14, %s559_s13 }
   0x6   : > { %p89_p1 = scmp.eq.s32.totalorder %s88_s20, 0  ;;  %p102_p2 = scmp.eq.s32.totalorder %s617_s16, 1 }
   0x7   : > { %p107_p3 = scmp.ne.s32.totalorder %s559_s13, %s555_s12  ;;  %p108_p4 = scmp.eq.s32.totalorder %s418_s17, 1 }
   0x8   : > { %s632_s21 = scalar_select %p89_p1, %s563_s14, %s91_s19  }
   0x9   : > { %p634_p5 = por %p102_p2, %p101_p0  ;;  %p638_p6 = por %p108_p4, %p107_p3 }
   0xa   : > { %p421_p7 = scmp.ge.s32.totalorder %s567_s15, 1  ;;  %p139_p8 = scmp.lt.s32.totalorder %s567_s15, 3 }
   0xc   : > { %p140_p9 = pnand %p421_p7, %p139_p8 }
   0xd   : > { %p162_p10 = scmp.lt.s32.totalorder (!%p140_p9), %s617_s16, 1  ;;  %v176_v0 = vlaneseq (!%p140_p9)  ;;  %v569_v1 = vmov (!%p140_p9), 1983009808   ;;  %v570_v3 = vmov (!%p140_p9), 0.0   ;;  %vm571_vm0 = vmmov (!%p140_p9), 0   ;;  %v167_v11 = vld [vmem:[%s719_s2] sm:$0xff] (!%p140_p9) }
   0xe   : > { %143 = sbr.rel (%p140_p9) target bundleno = 387 (0x183), region = 32  ;;  %v174_v2 = vunpack.c.l.s4 (!%p140_p9), %v569_v1  ;;  %440 = vmatprep.subr.bf16.mxu0 (!%p140_p9), %v570_v3  ;;  %446 = vmatprep.subr.bf16.mxu1 (!%p140_p9), %v570_v3  ;;  %vm186_vm1 = vcmask (!%p140_p9), 1041408   ;;  %vm182_vm2 = vcmask (!%p140_p9), 31744   ;;  %v169_v10 = vld [vmem:[%s718_s1] sm:$0xf] (!%p140_p9)  ;;  %s572_s6 = smov (!%p140_p9), 127  }
   0xf   : > { %v177_v4 = vshrl.u32 (!%p140_p9), %v176_v0, 7  ;;  %442 = vmatprep.mubr.msk.bf16.mxu0 (!%p140_p9), %vm571_vm0, %v570_v3  ;;  %448 = vmatprep.mubr.msk.bf16.mxu1 (!%p140_p9), %vm571_vm0, %v570_v3  ;;  %v573_v12 = vmov (!%p140_p9), 0   ;;  %s574_s7 = smov (!%p140_p9), 126   ;;  %v424_v16 = vld [vmem:[%s718_s1 + $0x4] sm:$0xf] (!%p140_p9)  ;;  %s159_s17 = sand.u32 (!%p140_p9), 1, %s559_s13  }
  0x10   : > { %v175_v5 = vunpack.c.0.s8 (!%p140_p9), %v174_v2  ;;  %503 = vset.pattern.permute.xlu1 (!%p140_p9), %v573_v12  ;;  %504 = vset.pattern.permute.xlu0 (!%p140_p9), %v573_v12  ;;  %v427_v19 = vld [vmem:[%s718_s1 + $0x8] sm:$0xf] (!%p140_p9)  ;;  %s422_s19 = sshll.u32 (!%p140_p9), %s159_s17, 3  ;;  %s431_s20 = sshll.u32 (!%p140_p9), %s617_s16, 7  ;;  %vm343_vm3 = vcmask (!%p140_p9), 130048  }
  0x11   : > { %338 = vperm.xlu1 (!%p140_p9), %503, %v167_v11   ;;  %s346_s29 = scalar_lea.sflag (!%p140_p9), [#allocation3], %s159_s17 }
  0x12   : > { %v178_v6 = vsub.s32 (!%p140_p9), %v175_v5, %v177_v4 }
  0x15   : > { %s163_s24 = scalar_select %p162_p10, %s617_s16, 1 }
  0x16   : > { %s575_s16 = smov [#allocation2]  }
  0x17   : > { %s423_s25 = sshll.u32 %s163_s24, 1  ;;  %s161_s24 = scalar_lea.vmem [#allocation2], %s422_s19 }
  0x18   : > { %s165_s28 = scalar_lea.vmem %s717_s0, %s423_s25  ;;  %s359_s25 = sshll.u32 %s161_s24, 4  ;;  %s677_s25 = int_to_ptr.vmem [resolvable:$true] %s359_s25 }
  0x19   : > { %v168_v7 = vld [vmem:[%s165_s28] sm:$0x3]  ;;  %s505_s30 = scalar_lea.vmem %s677_s25, 128  ;;  %s509_s4 = sshll.u32 %s575_s16, 4  ;;  %s510_s4 = int_to_ptr.vmem [resolvable:$false] %s509_s4 }
  0x1a   : > { %v179_v8 = vrot.slane %v168_v7, %v178_v6  ;;  %v234_v9 = vsel %vm186_vm1, %v168_v7, 0  ;;  %v428_v13 = vld.sshfl [vmem:[%s165_s28] sm:$0x3 pattern:$0x76325410]  ;;  %s675_s28 = scalar_lea.hbm %s720_s3, %s431_s20  ;;  %p506_p11 = scmp.ne.s32.totalorder %s677_s25, %s505_s30 }
  0x1b   : > { %447 = vmatpush3.bf16.msra.mxu1 %v234_v9  ;;  %s511_s5 = scalar_lea.vmem %s510_s4, 256  ;;  %p512_p0 = scmp.lt.s32.totalorder %s677_s25, %s510_s4 }
  0x1c   : > { %180 = vrot.lane.b32.xlu0 %v179_v8, %s572_s6  ;;  %p507_p12 = pnand %p506_p11, %p634_p5  ;;  %p513_p1 = scmp.lt.s32.totalorder %s511_s5, %s505_s30 }
  0x1e   : > { %449 = vmatmul.mubr.msk.bf16.vlgmr.msra.gmra.mrb[0].mxu1 %vm182_vm2, %v169_v10  ;;  %p508_p13 = pneg %p507_p12  ;;  %p514_p2 = por %p513_p1, %p512_p0 }
  0x20   : > { %287 = vrot.lane.b32.xlu0 %v428_v13, %s574_s7  ;;  %p515_p3 = pnand %p514_p2, %p508_p13 }
  0x8e   : > { %v181_v14 = vpop.permute.xlu0 %180 }
  0x8f   : > { %v188_v15 = vsel %vm186_vm1, %v181_v14, 0 }
  0x90   : > { %441 = vmatpush3.bf16.msra.mxu0 %v188_v15  ;;  %v339_v30 = vpop.permute.xlu1 %338 }
  0x91   : > { %452 = vmatprep.subr.bf16.mxu0 %v570_v3 }
  0x92   : > { %v288_v17 = vpop.permute.xlu0 %287 }
  0x93   : > { %v293_v18 = vsel %vm186_vm1, %v288_v17, 0  ;;  %443 = vmatmul.mubr.msk.bf16.vlgmr.msra.gmra.mrb[0].mxu0 %vm182_vm2, %v424_v16 }
  0x94   : > { %453 = vmatpush3.bf16.msra.mxu0 %v293_v18  ;;  %454 = vmatprep.mubr.msk.bf16.mxu0 %vm571_vm0, %v570_v3 }
  0x9b   : > { %455 = vmatmul.mubr.msk.bf16.vlgmr.msra.gmra.mrb[4].mxu0 %vm182_vm2, %v427_v19 }
  0xf1   : > { %v270_v20 = vpop.f32.mrb[0].mxu1 }
  0xf2   : > { %v450_v21 = vpop.f32.mrb[1].mxu1 }
  0xf3   : > { %v273_v22 = vpop.f32.mrb[2].mxu1 }
  0xf4   : > { %v451_v23 = vpop.f32.mrb[3].mxu1 }
 0x166   : > { %v224_v24 = vpop.f32.mrb[0].mxu0 }
 0x167   : > { %v444_v25 = vpop.f32.mrb[1].mxu0  ;;  %v271_v26 = vadd.f32 %v270_v20, %v224_v24 }
 0x168   : > { %v227_v27 = vpop.f32.mrb[2].mxu0 }
 0x169   : > { %v445_v28 = vpop.f32.mrb[3].mxu0 }
 0x16e   : > { %v329_v29 = vpop.f32.mrb[4].mxu0 }
 0x16f   : > { %v335_v31 = vadd.f32 %v329_v29, %v271_v26  ;;  %v456_v32 = vpop.f32.mrb[5].mxu0 }
 0x170   : > { %v332_v33 = vpop.f32.mrb[6].mxu0 }
 0x171   : > { %v341_v34 = vadd.f32 %v339_v30, %v335_v31  ;;  %v457_v35 = vpop.f32.mrb[7].mxu0 }
 0x173   : > { %v342_v36 = vmax.f32 %v341_v34, 0.0 }
 0x175   : > { %344 = vst.msk [vmem:[%s161_s24] sm:$0xff] %vm343_vm3, %v342_v36 }
 0x176   : > { %518 = shalt.err (!%p515_p3)
}
 0x177   : > { %s519_s6 = scalar_lea.hbm %s675_s28, 128  ;;  %s523_s9 = scalar_lea.hbm %s720_s3, 256 }
 0x178   : > { %p520_p4 = scmp.ne.s32.totalorder %s675_s28, %s519_s6  ;;  %p524_p9 = scmp.lt.u32.totalorder %s675_s28, %s720_s3 }
 0x179   : > { %p525_p10 = scmp.lt.u32.totalorder %s523_s9, %s519_s6  ;;  %p527_p12 = scmp.lt.u32.totalorder %s519_s6, %s675_s28 }
 0x17a   : > { %p521_p7 = pnand %p520_p4, %p634_p5 }
 0x17b   : > { %p526_p11 = por %p525_p10, %p524_p9 }
 0x17c   : > { %p522_p8 = pneg %p521_p7 }
 0x17d   : > { %p528_p13 = por %p527_p12, %p526_p11 }
 0x17f   : > { %p529_p0 = pnand %p528_p13, %p522_p8 }
 0x181   : > { %532 = shalt.err (!%p529_p0)
}
 0x182   : > { %458 = dma.vmem_to_hbm [thread:$0]  (%p634_p5), %s677_s25, 128, %s675_s28, %s346_s29  }
 0x183 PF: > { %p464_p1 = scmp.ge.s32.totalorder %s567_s15, 2  ;;  %s371_s17 = sand.u32 1, %s555_s12  }
 0x184   : > { %s372_s19 = scalar_lea.sflag [#allocation3], %s371_s17 }
 0x185   : > { %p461_p2 = pnand %p464_p1, %p638_p6 }
 0x187   : > { %550 = dma.done.wait (!%p461_p2), %s372_s19, 128  }
 0x188   : > { %552 = vsyncadd (!%p461_p2), %s372_s19, 4294967168  ;;  %p13_p3 = scmp.ge.s32.totalorder %s621_s18, 4   ;;  %s723_s12 = smov %s559_s13 }
 0x189   : > { %s724_s13 = smov %s563_s14  ;;  %s725_s14 = smov %s632_s21 }
 0x18a   : > { %s726_s15 = smov %s621_s18  ;;  %15 = sbr.rel (!%p13_p3) target bundleno = 3 (0x3), region = 69 }
 0x191   :  { %377 = vsyncpa [#allocation3], 1 }
 0x192   :  { %379 = vsyncpa [#allocation3 + $0x1], 1 }

</bundles_post_ra>
